<compile_context>
chip_gen: v7x
topology: tpu7x:2x2x1
jax: 0.10.0
libtpu: 0.0.40
codegen_flags: <defaults>
</compile_context>

<pallas_src>
import functools

import jax
import jax.numpy as jnp
from jax.experimental import pallas as pl
from jax.experimental.pallas import tpu as pltpu

NUM_LABELS = 7

_TM_MAX = 2048      # max rows per tile (large tiles amortize per-step overhead)
_MIN_STEPS = 4      # aim for >=4 grid steps when M is large (megacore on v7x)
_ROW_ALIGN = 16     # bf16 sublane packing


def _round_up(x, m):
    return ((x + m - 1) // m) * m


def _tiling(M):
    """Pick the row-tile size and grid length.  No wrapper-side padding:
    grid = cdiv(M, tm); the ragged last tile is handled in-kernel."""
    tm = min(_TM_MAX, _round_up(pl.cdiv(M, _MIN_STEPS), _ROW_ALIGN))
    if tm >= M:
        return M, 1                  # single exact-size block: always legal
    return tm, pl.cdiv(M, tm)        # tm is a multiple of 16 -> legal ragged tiling


def _vmem_limit_bytes(tm, H, N, extra_row_bytes=0):
    """Honest VMEM request: double-buffered token tile + resident label block +
    small side streams + headroom; never ask for more than 32 MiB (v7x)."""
    tok = 2 * tm * H * 2                         # bf16 token tile, double buffered
    lab = 2 * H * max(N, 128) * 2                # resident label block (padded lanes)
    side = 2 * (extra_row_bytes + tm * 4)        # ids / pred / partial blocks
    est = tok + lab + side + (4 << 20)           # + compiler headroom
    return int(min(max(est, 8 << 20), 32 << 20))


# ---------------------------------------------------------------------------
# Pallas kernels
# ---------------------------------------------------------------------------
def _pred_kernel(tok_ref, lab_ref, pred_ref):
    # tok_ref: (TM, H) bf16   lab_ref: (H, N) bf16 (resident across grid steps)
    # pred_ref: (TM, 1) int32
    s = jnp.dot(tok_ref[...], lab_ref[...],
                preferred_element_type=jnp.float32)                 # (TM, N) f32 on MXU
    # torch.argmax(dim=-1): index of the FIRST maximal element (keepdims math
    # only -> no row->lane relayouts; compare path stays f32).
    m = jnp.max(s, axis=-1, keepdims=True)                          # (TM, 1)
    idx = jax.lax.broadcasted_iota(jnp.int32, s.shape, 1)           # (TM, N)
    first_max = jnp.min(
        jnp.where(s == m, idx, jnp.int32(s.shape[1])), axis=-1, keepdims=True
    )                                                               # (TM, 1) int32
    pred_ref[...] = first_max
    # Rows past M in the ragged last tile are dropped by Pallas (OOB writes).


def _loss_kernel(total_rows, tok_ref, lab_ref, ids_ref, part_ref):
    # Fused matmul + per-row cross-entropy; the (TM, N) logits never hit HBM.
    # Output is a lane-dense per-tile partial sum: part_ref is (1, 8, 128) f32.
    tm = tok_ref.shape[0]
    s = jnp.dot(tok_ref[...], lab_ref[...],
                preferred_element_type=jnp.float32)                 # (TM, N) f32
    m = jnp.max(s, axis=-1, keepdims=True)                          # (TM, 1)
    logz = jnp.log(jnp.sum(jnp.exp(s - m), axis=-1, keepdims=True)) + m
    col = jax.lax.broadcasted_iota(jnp.int32, s.shape, 1)
    true_logit = jnp.sum(
        jnp.where(col == ids_ref[...], s, 0.0), axis=-1, keepdims=True
    )                                                               # (TM, 1)
    nll = logz - true_logit                                         # (TM, 1)

    # Mask out rows beyond M (ragged last tile reads unspecified data which
    # must not contribute to the sum).
    row = (jax.lax.broadcasted_iota(jnp.int32, (tm, 1), 0)
           + pl.program_id(0) * tm)
    nll = jnp.where(row < total_rows, nll, 0.0)

    partial = jnp.sum(nll, axis=0, keepdims=True)                   # (1, 1)
    part_ref[0] = jnp.broadcast_to(partial, (8, 128))               # lane-dense store


# ---------------------------------------------------------------------------
# Wrappers around pallas_call
# ---------------------------------------------------------------------------
def ls_ner_predict(token_logits, label_matrix):
    """token_logits: (B, S, H); label_matrix: (H, N) -> pred (B, S) int32."""
    B, S, H = token_logits.shape
    Hn, N = label_matrix.shape
    assert Hn == H
    M = B * S
    tm, grid = _tiling(M)

    tok2d = token_logits.reshape(M, H)           # metadata-only reshape
    if tok2d.dtype != jnp.bfloat16:              # no-op when the encoder emits bf16
        tok2d = tok2d.astype(jnp.bfloat16)
    lab = label_matrix.astype(jnp.bfloat16)      # (H, 7): tiny

    pred = pl.pallas_call(
        _pred_kernel,
        out_shape=jax.ShapeDtypeStruct((M, 1), jnp.int32),
        grid_spec=pl.GridSpec(
            grid=(grid,),
            in_specs=[
                pl.BlockSpec((tm, H), lambda i: (i, 0)),
                pl.BlockSpec((H, N), lambda i: (0, 0)),   # resident label matrix
            ],
            out_specs=pl.BlockSpec((tm, 1), lambda i: (i, 0)),
        ),
        compiler_params=pltpu.CompilerParams(
            dimension_semantics=("parallel",),
            vmem_limit_bytes=_vmem_limit_bytes(tm, H, N),
        ),
    )(tok2d, lab)

    return pred[:, 0].reshape(B, S)


def ls_ner_loss(token_logits, label_matrix, label_ids):
    """Mean cross-entropy over all B*S tokens (nn.CrossEntropyLoss default)."""
    B, S, H = token_logits.shape
    Hn, N = label_matrix.shape
    assert Hn == H
    M = B * S
    tm, grid = _tiling(M)

    tok2d = token_logits.reshape(M, H)
    if tok2d.dtype != jnp.bfloat16:
        tok2d = tok2d.astype(jnp.bfloat16)
    ids2d = label_ids.reshape(M, 1).astype(jnp.int32)
    lab = label_matrix.astype(jnp.bfloat16)

    partials = pl.pallas_call(
        functools.partial(_loss_kernel, M),
        out_shape=jax.ShapeDtypeStruct((grid, 8, 128), jnp.float32),
        grid_spec=pl.GridSpec(
            grid=(grid,),
            in_specs=[
                pl.BlockSpec((tm, H), lambda i: (i, 0)),
                pl.BlockSpec((H, N), lambda i: (0, 0)),   # resident label matrix
                pl.BlockSpec((tm, 1), lambda i: (i, 0)),
            ],
            out_specs=pl.BlockSpec((1, 8, 128), lambda i: (i, 0, 0)),
        ),
        compiler_params=pltpu.CompilerParams(
            dimension_semantics=("parallel",),
            vmem_limit_bytes=_vmem_limit_bytes(tm, H, N, extra_row_bytes=tm * 4),
        ),
    )(tok2d, lab, ids2d)

    # Sum of per-tile partials / number of tokens == mean CE (padded rows were
    # masked to zero inside the kernel).
    return jnp.sum(partials[:, 0, 0]) / M


# ---------------------------------------------------------------------------
# Synthetic deterministic encoders (stand-ins for the BERT encoders; glue)
# ---------------------------------------------------------------------------
def init_params(key, vocab, hidden):
    k1, k2, k3 = jax.random.split(key, 3)
    scale = 0.02
    return dict(
        emb=scale * jax.random.normal(k1, (vocab, hidden), jnp.float32),
        W_label=scale * jax.random.normal(k2, (hidden, hidden), jnp.float32),
        b_label=jnp.zeros((hidden,), jnp.float32),
        W_tok=scale * jax.random.normal(k3, (hidden, hidden), jnp.float32),
        b_tok=jnp.zeros((hidden,), jnp.float32),
    )


def label_encoder(params, input_ids, attention_mask):
    # (num_labels, Ls) -> (num_labels, H): masked mean pool + linear + tanh
    emb = jnp.take(params["emb"], input_ids, axis=0)                  # (L, Ls, H)
    mask = attention_mask.astype(jnp.float32)[..., None]              # (L, Ls, 1)
    pooled = (emb * mask).sum(axis=1) / jnp.maximum(mask.sum(axis=1), 1.0)
    return jnp.tanh(pooled @ params["W_label"] + params["b_label"])   # (L, H)


def token_encoder(params, input_ids, attention_mask):
    # (B, S) -> (B, S, H): embedding + linear + tanh, masked.
    # Emitted directly in bf16 so the cast fuses into this producer fusion and
    # the Pallas kernel reads bf16 without an extra HBM convert pass.
    emb = jnp.take(params["emb"], input_ids, axis=0)                  # (B, S, H)
    h = jnp.tanh(emb @ params["W_tok"] + params["b_tok"])
    h = h * attention_mask.astype(h.dtype)[..., None]
    return h.astype(jnp.bfloat16)


# ---------------------------------------------------------------------------
# LS_NER.forward
# ---------------------------------------------------------------------------
def ls_ner_forward(params, label_input_ids, label_attention_mask,
                   token_input_ids, token_attention_mask, label_ids=None):
    label_logits = label_encoder(params, label_input_ids, label_attention_mask)  # (7, H)
    # transpose(1, 0).repeat(B, 1, 1) -> identical (H, 7) matrix per batch element
    label_matrix = label_logits.T                                                # (H, 7)
    token_logits = token_encoder(params, token_input_ids, token_attention_mask)  # (B, S, H) bf16

    if label_ids is not None:
        return ls_ner_loss(token_logits, label_matrix, label_ids)
    return ls_ner_predict(token_logits, label_matrix)


if __name__ == "__main__":
    # Small deterministic example shapes implied by the module:
    #   7 label descriptions, label seq=4, batch=2 sentences of seq=8, hidden=32.
    vocab, hidden = 64, 32
    num_labels, label_seq = NUM_LABELS, 4
    batch, seq = 2, 8

    key = jax.random.PRNGKey(0)
    kp, k1, k2, k3 = jax.random.split(key, 4)
    params = init_params(kp, vocab, hidden)

    label_input_ids = jax.random.randint(k1, (num_labels, label_seq), 0, vocab, jnp.int32)
    label_attention_mask = jnp.ones((num_labels, label_seq), jnp.int32)
    token_input_ids = jax.random.randint(k2, (batch, seq), 0, vocab, jnp.int32)
    token_attention_mask = jnp.ones((batch, seq), jnp.int32)
    label_ids = jax.random.randint(k3, (batch, seq), 0, NUM_LABELS, jnp.int32)

    # Inference path (fused matmul + first-max argmax kernel).
    fwd = jax.jit(functools.partial(ls_ner_forward, params))
    pred = fwd(label_input_ids, label_attention_mask,
               token_input_ids, token_attention_mask)
    jax.block_until_ready(pred)
    assert pred.shape == (batch, seq)
    assert int(jnp.min(pred)) >= 0 and int(jnp.max(pred)) < NUM_LABELS

    # Training path (fused matmul + cross-entropy partial-sum kernel).
    loss_fn = jax.jit(functools.partial(ls_ner_forward, params))
    loss = loss_fn(label_input_ids, label_attention_mask,
                   token_input_ids, token_attention_mask, label_ids)
    jax.block_until_ready(loss)
    assert loss.shape == () and bool(jnp.isfinite(loss))

    print("KERNEL_OK")
</pallas_src>

<mosaic_0001>
module attributes {stable_mosaic.version = 11 : i64} {
  func.func @_pred_kernel(%arg0: i32, %arg1: memref<16x32xbf16, #tpu.memory_space<vmem>>, %arg2: memref<32x7xbf16, #tpu.memory_space<vmem>>, %arg3: memref<16x1xi32, #tpu.memory_space<vmem>>) attributes {dimension_semantics = [#tpu.dimension_semantics<parallel>], iteration_bounds = array<i64: 1>, scalar_prefetch = 0 : i64, scratch_operands = 0 : i64, tpu.core_type = #tpu.core_type<tc>, window_params = [{transform_indices = @transform_0, window_bounds = array<i64: 16, 32>}, {pipeline_mode = #tpu.pipeline_mode<synchronous>, transform_indices = @transform_1, window_bounds = array<i64: 32, 7>}, {transform_indices = @transform_2, window_bounds = array<i64: 16, 1>}]} {
    %c0 = arith.constant 0 : index
    %c0_0 = arith.constant 0 : index
    %0 = vector.load %arg1[%c0, %c0_0] : memref<16x32xbf16, #tpu.memory_space<vmem>>, vector<16x32xbf16>
    %c0_1 = arith.constant 0 : index
    %c0_2 = arith.constant 0 : index
    %1 = vector.load %arg2[%c0_1, %c0_2] : memref<32x7xbf16, #tpu.memory_space<vmem>>, vector<32x7xbf16>
    %cst = arith.constant dense<0.000000e+00> : vector<16x7xf32>
    %2 = tpu.matmul %0, %1, %cst {dimension_numbers = #tpu.dot_dimension_numbers<[1], [0], [0], [1], [0, 0, 1, 1], [], []>} : vector<16x32xbf16>, vector<32x7xbf16>, vector<16x7xf32> -> vector<16x7xf32>
    %cst_3 = arith.constant dense<0xFF800000> : vector<16xf32>
    %3 = vector.multi_reduction <maximumf>, %2, %cst_3 [1] : vector<16x7xf32> to vector<16xf32>
    %4 = vector.shape_cast %3 : vector<16xf32> to vector<16x1xf32>
    %5 = tpu.iota {dimensions = array<i32: 1>} : vector<16x7xi32>
    %6 = vector.broadcast %4 : vector<16x1xf32> to vector<16x7xf32>
    %7 = arith.cmpf oeq, %2, %6 : vector<16x7xf32>
    %c7_i32 = arith.constant 7 : i32
    %8 = vector.broadcast %c7_i32 : i32 to vector<16x7xi32>
    %9 = arith.select %7, %5, %8 : vector<16x7xi1>, vector<16x7xi32>
    %cst_4 = arith.constant dense<2147483647> : vector<16xi32>
    %10 = vector.multi_reduction <minsi>, %9, %cst_4 [1] : vector<16x7xi32> to vector<16xi32>
    %11 = vector.shape_cast %10 : vector<16xi32> to vector<16x1xi32>
    %c0_5 = arith.constant 0 : index
    %c0_6 = arith.constant 0 : index
    %12 = vector.load %arg3[%c0_5, %c0_6] : memref<16x1xi32, #tpu.memory_space<vmem>>, vector<16x1xi32>
    tpu.vector_store %arg3[%c0_5, %c0_6], %11 {strides = array<i32>} : memref<16x1xi32, #tpu.memory_space<vmem>>, vector<16x1xi32>,
    return
  }
  func.func @transform_0(%arg0: i32) -> (i32, i32) {
    %c0_i32 = arith.constant 0 : i32
    %c0_i32_0 = arith.constant 0 : i32
    return %arg0, %c0_i32 : i32, i32
  }
  func.func @transform_1(%arg0: i32) -> (i32, i32) {
    %c0_i32 = arith.constant 0 : i32
    %c0_i32_0 = arith.constant 0 : i32
    %c0_i32_1 = arith.constant 0 : i32
    return %c0_i32, %c0_i32_0 : i32, i32
  }
  func.func @transform_2(%arg0: i32) -> (i32, i32) {
    %c0_i32 = arith.constant 0 : i32
    %c0_i32_0 = arith.constant 0 : i32
    return %arg0, %c0_i32 : i32, i32
  }
}

</mosaic_0001>

<bundles_post_ra>
// kernel: squeeze.1
= control target key start
LH: loop header
LB: loop body
LE: loop exit
PB: predicated region body
PF: predicated region fallthrough
CT: control target
= control target key end

     0   :  { %s85_s0 = inlined_call_operand.vmem [shape: s32[16], index: 0, kind: input, shape index: {}]   ;;  %s86_s1 = inlined_call_operand.hbm [shape: s32[2,8], index: 1, kind: output, shape index: {}]  }
   0x1   :  { %v5_v0 = vld [vmem:[%s85_s0] sm:$0x1] }
   0x2   :  { %2 = vsyncpa [#allocation1], 0  ;;  %6 = vst [vmem:[#allocation3] sm:$0x1] %v5_v0  ;;  %vm8_vm0 = vcmask 64512   ;;  %s58_s0 = smov 120  }
   0x3   :  { %s59_s8 = smov [#allocation0]  }
   0x4   :  { %s26_s9 = sshll.u32 %s59_s8, 4  ;;  %s27_s9 = int_to_ptr.vmem [resolvable:$true] %s26_s9 }
   0x5   :  { %s34_s10 = scalar_lea.vmem %s27_s9, 32  ;;  %p39_p1 = scmp.lt.s32.totalorder %s27_s9, %s27_s9 }
   0x6   :  { %p35_p0 = scmp.ne.s32.totalorder %s27_s9, %s34_s10  ;;  %p40_p2 = scmp.lt.s32.totalorder %s34_s10, %s34_s10 }
   0x8   :  { %p41_p3 = por %p40_p2, %p39_p1 }
   0x9   :  { %v10_v1 = vld [vmem:[#allocation3] sm:$0x1]  }
   0xa   :  { %v7_v2 = vld [vmem:[#allocation3] sm:$0x1]   ;;  %11 = vrot.lane.b32.xlu0 %v10_v1, %s58_s0  ;;  %p42_p4 = pnand %p41_p3, %p35_p0 }
   0xb   :  { %9 = vst.msk [vmem:[#allocation2] sm:$0x1] %vm8_vm0, %v7_v2  }
  0x7c   :  { %v12_v3 = vpop.permute.xlu0 %11  }
  0x7d   :  { %15 = vst.msk [vmem:[#allocation2 + $0x1] sm:$0x1] %vm8_vm0, %v12_v3  }
  0x84   :  { %v19_v4 = vld [vmem:[#allocation2] sm:$0x3] }
  0x85   :  { %21 = vst [vmem:[#allocation0] sm:$0x3] %v19_v4 }
  0x86   :  { %45 = shalt.err (!%p42_p4)
}
  0x87   :  { %s46_s13 = scalar_lea.hbm %s86_s1, 32 }
  0x88   :  { %p47_p5 = scmp.ne.s32.totalorder %s86_s1, %s46_s13  ;;  %p50_p6 = scmp.lt.u32.totalorder %s46_s13, %s86_s1 }
  0x8a   :  { %p52_p7 = pnand %p50_p6, %p47_p5 }
  0x8c   :  { %55 = shalt.err (!%p52_p7)
}
  0x8d   :  { %29 = dma.vmem_to_hbm [thread:$0]  %s27_s9, 32, %s86_s1, [#allocation1]  }
  0x8e   :  { %56 = dma.done.wait [#allocation1], 32  }
  0x8f   :  { %57 = vsyncadd [#allocation1], 4294967264 }
  0x90   :  { %31 = vsyncpa [#allocation1], 1 }

// kernel: ls_ner_forward.1
= control target key start
LH: loop header
LB: loop body
LE: loop exit
PB: predicated region body
PF: predicated region fallthrough
CT: control target
= control target key end

     0   :  { %v150_v0 = vmov 0.0   ;;  %vm151_vm0 = vmmov 0   ;;  %vm35_vm1 = vcmask 261120   ;;  %vm80_vm2 = vcmask 56320   ;;  %s186_s1 = inlined_call_operand.vmem [shape: bf16[32,7], index: 1, kind: input, shape index: {}]   ;;  %s187_s0 = inlined_call_operand.vmem [shape: bf16[16,32], index: 0, kind: input, shape index: {}]   ;;  %s188_s2 = inlined_call_operand.vmem [shape: s32[16,1], index: 2, kind: output, shape index: {}]  }
   0x1   :  { %137 = vmatprep.subr.bf16.mxu0 %v150_v0  ;;  %v147_v1 = vld [vmem:[%s186_s1] sm:$0xff]   ;;  %141 = vmatprep.mubr.msk.bf16.mxu0 %vm151_vm0, %v150_v0  ;;  %v148_v2 = vld [vmem:[%s186_s1 + $0x8] sm:$0xff]   ;;  %v87_v10 = vlaneseq  ;;  %vm123_vm7 = vcmask 7168  }
   0x2   :  { %138 = vmatpush3.bf16.msra.mxu0 %v147_v1  ;;  %v149_v3 = vld [vmem:[%s187_s0] sm:$0xff]  }
   0x3   :  { %139 = vmatprep.subr.bf16.mxu0 %v150_v0  ;;  %v88_v11 = vand.u32 127, %v87_v10 }
   0x6   :  { %140 = vmatpush3.bf16.msra.mxu0 %v148_v2 }
   0x9   :  { %142 = vmatmul.mubr.msk.bf16.vlgmr.msra.gmra.mrb[0].mxu0 %vm35_vm1, %v149_v3 }
  0xdc   :  { %v73_v4 = vpop.f32.mrb[0].mxu0 }
  0xdd   :  { %v143_v5 = vpop.f32.mrb[1].mxu0  ;;  %v81_v6 = vsel %vm80_vm2, %v73_v4, -inf }
  0xde   :  { %82 = vmax.xlane.f32.xlu0 %v81_v6  ;;  %v76_v7 = vpop.f32.mrb[2].mxu0 }
  0xdf   :  { %v144_v8 = vpop.f32.mrb[3].mxu0  ;;  %v84_v9 = vsel %vm80_vm2, %v76_v7, -inf }
  0xe2   :  { %85 = vmax.xlane.f32.xlu0 %v84_v9 }
 0x16b   :  { %v83_v12 = vpop.xlane.xlu0 %82 }
 0x16c   :  { %vm89_vm3 = vcmp.eq.f32.partialorder %v73_v4, %v83_v12 }
 0x16d   :  { %v91_v13 = vsel %vm89_vm3, %v88_v11, 7 }
 0x16e   :  { %v93_v14 = vsel %vm80_vm2, %v91_v13, 2147483647 }
 0x16f   :  { %v86_v15 = vpop.xlane.xlu0 %85  ;;  %v95_v16 = vshra.s32 %v93_v14, 16  ;;  %v94_v22 = vand.u32 65535, %v93_v14 }
 0x170   :  { %vm90_vm4 = vcmp.eq.f32.partialorder %v76_v7, %v86_v15 }
 0x171   :  { %v92_v17 = vsel %vm90_vm4, %v88_v11, 7  ;;  %v97_v18 = vcvt.s32.f32 %v95_v16  ;;  %v96_v24 = vcvt.s32.f32 %v94_v22 }
 0x172   :  { %v108_v19 = vsel %vm80_vm2, %v92_v17, 2147483647 }
 0x173   :  { %98 = vmin.xlane.f32.xlu1 %v97_v18  ;;  %v110_v20 = vshra.s32 %v108_v19, 16  ;;  %v109_v25 = vand.u32 65535, %v108_v19 }
 0x175   :  { %v112_v21 = vcvt.s32.f32 %v110_v20  ;;  %v111_v28 = vcvt.s32.f32 %v109_v25 }
 0x177   :  { %113 = vmin.xlane.f32.xlu1 %v112_v21 }
 0x200   :  { %v99_v23 = vpop.xlane.xlu1 %98 }
 0x201   :  { %vm100_vm5 = vcmp.eq.f32.partialorder %v97_v18, %v99_v23  ;;  %v105_v30 = vcvt.f32.s32 %v99_v23 }
 0x202   :  { %v101_v26 = vsel %vm100_vm5, %v96_v24, inf }
 0x203   :  { %102 = vmin.xlane.f32.xlu0 %v101_v26  ;;  %v106_v32 = vshll.u32 %v105_v30, 16 }
 0x204   :  { %v114_v27 = vpop.xlane.xlu1 %113 }
 0x205   :  { %vm115_vm6 = vcmp.eq.f32.partialorder %v112_v21, %v114_v27  ;;  %v120_v33 = vcvt.f32.s32 %v114_v27 }
 0x206   :  { %v116_v29 = vsel %vm115_vm6, %v111_v28, inf }
 0x207   :  { %117 = vmin.xlane.f32.xlu1 %v116_v29  ;;  %v121_v37 = vshll.u32 %v120_v33, 16 }
 0x290   :  { %v103_v31 = vpop.xlane.xlu0 %102 }
 0x291   :  { %v104_v34 = vcvt.f32.s32 %v103_v31 }
 0x293   :  { %v107_v35 = vadd.s32 %v106_v32, %v104_v34 }
 0x294   :  { %v118_v36 = vpop.xlane.xlu1 %117 }
 0x295   :  { %124 = vst.msk [vmem:[%s188_s2] sm:$0xff] %vm123_vm7, %v107_v35  ;;  %v119_v38 = vcvt.f32.s32 %v118_v36 }
 0x297   :  { %v122_v39 = vadd.s32 %v121_v37, %v119_v38 }
 0x299   :  { %125 = vst.msk [vmem:[%s188_s2 + $0x8] sm:$0xff] %vm123_vm7, %v122_v39 }

</bundles_post_ra>
